<compile_context>
chip_gen: v5e
topology: v5e:2x2
jax: 0.10.0
libtpu: 0.0.40
codegen_flags: <defaults>
</compile_context>

<pallas_src>
import jax
import jax.numpy as jnp
from jax.experimental import pallas as pl
from jax.experimental.pallas import tpu as pltpu


def _round_up(x, m):
    return (x + m - 1) // m * m


def _pad2(x, rows, cols):
    pr, pc = rows - x.shape[0], cols - x.shape[1]
    if pr or pc:
        x = jnp.pad(x, ((0, pr), (0, pc)))
    return x


# ---------------------------------------------------------------------------
# Stage 0 (lin-first branch only): H = (X * norm) @ W, computed once.
# Grid = (row blocks of X,).
# ---------------------------------------------------------------------------
def _feat_xform_kernel(x_ref, norm_ref, w_ref, h_ref):
    xn = x_ref[...] * norm_ref[...]
    h_ref[...] = jnp.dot(xn, w_ref[...], preferred_element_type=jnp.float32)


# ---------------------------------------------------------------------------
# Main aggregation kernels.  Grid = (i: row blocks of adj/out, k: reduction
# over adj columns).  Output BlockSpec returns the same block for every k, so
# o_ref / acc_ref stay resident across the whole reduction.
# ---------------------------------------------------------------------------
def _gcn_kernel_lin_first(adj_ref, h_ref, norm_i_ref, b_ref, o_ref, acc_ref):
    # in_feats >= out_feats:  acc_i += adj_ik @ H_k ; out = acc * norm_i + bias
    k = pl.program_id(1)

    @pl.when(k == 0)
    def _():
        acc_ref[...] = jnp.zeros_like(acc_ref)

    a = adj_ref[...].astype(jnp.float32)
    acc_ref[...] += jnp.dot(a, h_ref[...], preferred_element_type=jnp.float32)

    @pl.when(k == pl.num_programs(1) - 1)
    def _():
        o_ref[...] = acc_ref[...] * norm_i_ref[...] + b_ref[...]


def _gcn_kernel_agg_first(adj_ref, x_ref, norm_k_ref, norm_i_ref, w_ref,
                          b_ref, o_ref, acc_ref):
    # in_feats < out_feats:  acc_i += adj_ik @ (X_k * norm_k);  finalize acc @ W
    k = pl.program_id(1)

    @pl.when(k == 0)
    def _():
        acc_ref[...] = jnp.zeros_like(acc_ref)

    xn = x_ref[...] * norm_k_ref[...]
    a = adj_ref[...].astype(jnp.float32)
    acc_ref[...] += jnp.dot(a, xn, preferred_element_type=jnp.float32)

    @pl.when(k == pl.num_programs(1) - 1)
    def _():
        h = jnp.dot(acc_ref[...], w_ref[...], preferred_element_type=jnp.float32)
        o_ref[...] = h * norm_i_ref[...] + b_ref[...]


def dense_gcn_conv(adj, features, norm, weight, bias, *,
                   tm=512, tk=512, cast_adj_bf16=True):
    """Fused DenseGCNConv forward on TPU via Pallas.

    adj:      (N, N)      float32 (0/1 adjacency; exact in bf16 when
                           cast_adj_bf16=True — set False for weighted adj)
    features: (N, Fin)    float32
    norm:     (N, 1)      float32
    weight:   (Fin, Fout) float32
    bias:     (Fout,)     float32
    returns:  (N, Fout)   float32
    """
    N, fin = features.shape
    fout = weight.shape[1]
    assert adj.shape == (N, N)
    assert norm.shape == (N, 1)
    assert weight.shape == (fin, fout)
    assert bias.shape == (fout,)

    # --- padded / tiled geometry (lane dims all multiples of 128)
    fin_p = _round_up(fin, 128)
    fout_p = _round_up(fout, 128)
    n128 = _round_up(N, 128)
    tm_eff = min(_round_up(tm, 128), n128)
    tk_eff = min(_round_up(tk, 128), n128)
    np_r = _round_up(N, tm_eff)          # padded row count of adj / output
    np_c = _round_up(N, tk_eff)          # padded col count of adj / rows of X

    # --- pad + cast inputs (zero padding is exact for this computation)
    adj_p = _pad2(adj.astype(jnp.float32), np_r, np_c)
    if cast_adj_bf16:
        adj_p = adj_p.astype(jnp.bfloat16)   # 0/1 exact; upcast in-kernel
    x_p = _pad2(features.astype(jnp.float32), np_c, fin_p)
    norm_f = norm.astype(jnp.float32)
    norm_r = _pad2(norm_f, np_r, 1)          # per output-row scale
    norm_c = _pad2(norm_f, np_c, 1)          # per K-row scale
    w_p = _pad2(weight.astype(jnp.float32), fin_p, fout_p)
    b_p = _pad2(bias.astype(jnp.float32).reshape(1, fout), 1, fout_p)

    agg_first = fin < fout
    grid = (np_r // tm_eff, np_c // tk_eff)

    if agg_first:
        # -------- aggregate-first: acc += adj @ (X*norm), epilogue acc @ W ----
        flops = 2 * N * N * fin + 2 * N * fin * fout
        bytes_accessed = (adj_p.size * adj_p.dtype.itemsize
                          + grid[0] * (x_p.size + np_c) * 4
                          + (w_p.size + b_p.size + np_r) * 4
                          + np_r * fout_p * 4)
        cost = pl.CostEstimate(flops=int(flops), transcendentals=0,
                               bytes_accessed=int(bytes_accessed))
        out_padded = pl.pallas_call(
            _gcn_kernel_agg_first,
            out_shape=jax.ShapeDtypeStruct((np_r, fout_p), jnp.float32),
            grid_spec=pltpu.PrefetchScalarGridSpec(
                num_scalar_prefetch=0,
                grid=grid,
                in_specs=[
                    pl.BlockSpec((tm_eff, tk_eff), lambda i, k: (i, k)),  # adj
                    pl.BlockSpec((tk_eff, fin_p), lambda i, k: (k, 0)),   # X
                    pl.BlockSpec((tk_eff, 1), lambda i, k: (k, 0)),       # norm_k
                    pl.BlockSpec((tm_eff, 1), lambda i, k: (i, 0)),       # norm_i
                    pl.BlockSpec((fin_p, fout_p), lambda i, k: (0, 0)),   # W
                    pl.BlockSpec((1, fout_p), lambda i, k: (0, 0)),       # bias
                ],
                out_specs=pl.BlockSpec((tm_eff, fout_p), lambda i, k: (i, 0)),
                scratch_shapes=[pltpu.VMEM((tm_eff, fin_p), jnp.float32)],
            ),
            compiler_params=pltpu.CompilerParams(
                dimension_semantics=("parallel", "arbitrary")),
            cost_estimate=cost,
        )(adj_p, x_p, norm_c, norm_r, w_p, b_p)
        return out_padded[:N, :fout]

    # -------- linear-first: H = (X*norm) @ W once, then acc += adj @ H -------
    h_p = pl.pallas_call(
        _feat_xform_kernel,
        out_shape=jax.ShapeDtypeStruct((np_c, fout_p), jnp.float32),
        grid_spec=pltpu.PrefetchScalarGridSpec(
            num_scalar_prefetch=0,
            grid=(np_c // tk_eff,),
            in_specs=[
                pl.BlockSpec((tk_eff, fin_p), lambda i: (i, 0)),   # X
                pl.BlockSpec((tk_eff, 1), lambda i: (i, 0)),       # norm
                pl.BlockSpec((fin_p, fout_p), lambda i: (0, 0)),   # W
            ],
            out_specs=pl.BlockSpec((tk_eff, fout_p), lambda i: (i, 0)),
        ),
        compiler_params=pltpu.CompilerParams(
            dimension_semantics=("parallel",)),
    )(x_p, norm_c, w_p)

    flops = 2 * N * N * fout
    bytes_accessed = (adj_p.size * adj_p.dtype.itemsize
                      + grid[0] * h_p.size * 4
                      + (b_p.size + np_r) * 4
                      + np_r * fout_p * 4)
    cost = pl.CostEstimate(flops=int(flops), transcendentals=0,
                           bytes_accessed=int(bytes_accessed))
    out_padded = pl.pallas_call(
        _gcn_kernel_lin_first,
        out_shape=jax.ShapeDtypeStruct((np_r, fout_p), jnp.float32),
        grid_spec=pltpu.PrefetchScalarGridSpec(
            num_scalar_prefetch=0,
            grid=grid,
            in_specs=[
                pl.BlockSpec((tm_eff, tk_eff), lambda i, k: (i, k)),   # adj
                pl.BlockSpec((tk_eff, fout_p), lambda i, k: (k, 0)),   # H
                pl.BlockSpec((tm_eff, 1), lambda i, k: (i, 0)),        # norm_i
                pl.BlockSpec((1, fout_p), lambda i, k: (0, 0)),        # bias
            ],
            out_specs=pl.BlockSpec((tm_eff, fout_p), lambda i, k: (i, 0)),
            scratch_shapes=[pltpu.VMEM((tm_eff, fout_p), jnp.float32)],
        ),
        compiler_params=pltpu.CompilerParams(
            dimension_semantics=("parallel", "arbitrary")),
        cost_estimate=cost,
    )(adj_p, h_p, norm_r, b_p)
    return out_padded[:N, :fout]


def _reference(adj, features, norm, weight, bias):
    fin, fout = weight.shape
    xn = features * norm
    if fin < fout:
        h = (adj @ xn) @ weight
    else:
        h = adj @ (xn @ weight)
    return h * norm + bias[None, :]


if __name__ == "__main__":
    key = jax.random.PRNGKey(0)

    def make_graph(k, n, fin, fout):
        k_adj, k_x, k_w, k_b = jax.random.split(k, 4)
        # Symmetric 0/1 adjacency with self-loops + symmetric degree norm
        # (norm = deg^{-1/2}), the standard GCN setup this module expects.
        a = (jax.random.uniform(k_adj, (n, n)) < 0.1).astype(jnp.float32)
        adj = jnp.maximum(a, a.T)
        adj = adj.at[jnp.arange(n), jnp.arange(n)].set(1.0)
        deg = adj.sum(axis=1, keepdims=True)
        norm = 1.0 / jnp.sqrt(deg)
        features = jax.random.normal(k_x, (n, fin), dtype=jnp.float32)
        weight = jax.random.normal(k_w, (fin, fout), dtype=jnp.float32)
        bias = jax.random.normal(k_b, (fout,), dtype=jnp.float32)
        return adj, features, norm, weight, bias

    k1, k2 = jax.random.split(key)

    # Case 1: in_feats >= out_feats  -> linear-first branch (2 kernels).
    args1 = make_graph(k1, 128, 64, 32)
    out1 = jax.block_until_ready(dense_gcn_conv(*args1))
    ref1 = _reference(*args1)
    assert out1.shape == (128, 32)
    assert jnp.allclose(out1, ref1, atol=1e-3, rtol=1e-3), "mismatch (lin-first)"

    # Case 2: in_feats < out_feats  -> aggregate-first branch, ragged N (pads).
    args2 = make_graph(k2, 200, 16, 48)
    out2 = jax.block_until_ready(dense_gcn_conv(*args2))
    ref2 = _reference(*args2)
    assert out2.shape == (200, 48)
    assert jnp.allclose(out2, ref2, atol=1e-3, rtol=1e-3), "mismatch (agg-first)"

    print("KERNEL_OK")
</pallas_src>

<mosaic_0001>
module attributes {stable_mosaic.version = 11 : i64} {
  func.func @_feat_xform_kernel(%arg0: i32, %arg1: memref<128x128xf32, #tpu.memory_space<vmem>>, %arg2: memref<128x1xf32, #tpu.memory_space<vmem>>, %arg3: memref<128x128xf32, #tpu.memory_space<vmem>>, %arg4: memref<128x128xf32, #tpu.memory_space<vmem>>) attributes {dimension_semantics = [#tpu.dimension_semantics<parallel>], iteration_bounds = array<i64: 1>, scalar_prefetch = 0 : i64, scratch_operands = 0 : i64, tpu.core_type = #tpu.core_type<tc>, window_params = [{transform_indices = @transform_0, window_bounds = array<i64: 128, 128>}, {transform_indices = @transform_1, window_bounds = array<i64: 128, 1>}, {pipeline_mode = #tpu.pipeline_mode<synchronous>, transform_indices = @transform_2, window_bounds = array<i64: 128, 128>}, {transform_indices = @transform_3, window_bounds = array<i64: 128, 128>}]} {
    %c0 = arith.constant 0 : index
    %c0_0 = arith.constant 0 : index
    %0 = vector.load %arg1[%c0, %c0_0] : memref<128x128xf32, #tpu.memory_space<vmem>>, vector<128x128xf32>
    %c0_1 = arith.constant 0 : index
    %c0_2 = arith.constant 0 : index
    %1 = vector.load %arg2[%c0_1, %c0_2] : memref<128x1xf32, #tpu.memory_space<vmem>>, vector<128x1xf32>
    %2 = vector.broadcast %1 : vector<128x1xf32> to vector<128x128xf32>
    %3 = arith.mulf %0, %2 : vector<128x128xf32>
    %c0_3 = arith.constant 0 : index
    %c0_4 = arith.constant 0 : index
    %4 = vector.load %arg3[%c0_3, %c0_4] : memref<128x128xf32, #tpu.memory_space<vmem>>, vector<128x128xf32>
    %cst = arith.constant dense<0.000000e+00> : vector<128x128xf32>
    %5 = tpu.matmul %3, %4, %cst {dimension_numbers = #tpu.dot_dimension_numbers<[1], [0], [0], [1], [0, 0, 1, 1], [], []>} : vector<128x128xf32>, vector<128x128xf32>, vector<128x128xf32> -> vector<128x128xf32>
    %c0_5 = arith.constant 0 : index
    %c0_6 = arith.constant 0 : index
    %6 = vector.load %arg4[%c0_5, %c0_6] : memref<128x128xf32, #tpu.memory_space<vmem>>, vector<128x128xf32>
    tpu.vector_store %arg4[%c0_5, %c0_6], %5 {strides = array<i32>} : memref<128x128xf32, #tpu.memory_space<vmem>>, vector<128x128xf32>,
    return
  }
  func.func @transform_0(%arg0: i32) -> (i32, i32) {
    %c0_i32 = arith.constant 0 : i32
    %c0_i32_0 = arith.constant 0 : i32
    return %arg0, %c0_i32 : i32, i32
  }
  func.func @transform_1(%arg0: i32) -> (i32, i32) {
    %c0_i32 = arith.constant 0 : i32
    %c0_i32_0 = arith.constant 0 : i32
    return %arg0, %c0_i32 : i32, i32
  }
  func.func @transform_2(%arg0: i32) -> (i32, i32) {
    %c0_i32 = arith.constant 0 : i32
    %c0_i32_0 = arith.constant 0 : i32
    %c0_i32_1 = arith.constant 0 : i32
    return %c0_i32, %c0_i32_0 : i32, i32
  }
  func.func @transform_3(%arg0: i32) -> (i32, i32) {
    %c0_i32 = arith.constant 0 : i32
    %c0_i32_0 = arith.constant 0 : i32
    return %arg0, %c0_i32 : i32, i32
  }
}

</mosaic_0001>

<bundles_post_ra>
// kernel: tpu_custom_call.1
= control target key start
LH: loop header
LB: loop body
LE: loop exit
PB: predicated region body
PF: predicated region fallthrough
CT: control target
= control target key end

     0   :  { %8 = vsyncpa [#allocation3], 0  ;;  %s516_s0 = inlined_call_operand.vmem [shape: f32[128,128], index: 0, kind: input, shape index: {}]   ;;  %s517_s1 = inlined_call_operand.vmem [shape: f32[128,1], index: 1, kind: input, shape index: {}]   ;;  %s518_s2 = inlined_call_operand.hbm [shape: f32[128,128], index: 2, kind: input, shape index: {}]   ;;  %s519_s3 = inlined_call_operand.hbm [shape: f32[128,128], index: 3, kind: output, shape index: {}]  }
   0x1   :  { %9 = vsyncpa [#allocation4], 0  ;;  %s18_s14 = sshll.u32 %s518_s2, 4  ;;  %s383_s15 = smov [#allocation2]   ;;  %s19_s14 = int_to_ptr.hbm [resolvable:$true] %s18_s14 }
   0x2   :  { %s20_s16 = sshll.u32 %s383_s15, 4  ;;  %s384_s17 = smov 128   ;;  %s21_s16 = int_to_ptr.vmem [resolvable:$true] %s20_s16 }
   0x3   :  { %s385_s18 = smov 8  }
   0x4   :  { %26 = dma.hbm_to_vmem [thread:$0]  %s19_s14, 2048, %s21_s16, [#allocation3], %s384_s17, %s384_s17, %s385_s18  }
   0x5   :  { %379 = dma.done.wait [#allocation3], 2048  }
   0x6   :  { %380 = vsyncadd [#allocation3], 4294965248  ;;  %v386_v0 = vmov 0   ;;  %v56_v1 = vld [vmem:[%s517_s1 + $0x48] sm:$0xff]  ;;  %v55_v2 = vld [vmem:[%s517_s1 + $0x40] sm:$0xff]  ;;  %s262_s4 = sshll.u32 %s519_s3, 4  ;;  %s263_s4 = int_to_ptr.hbm [resolvable:$true] %s262_s4 }
   0x7   :  { %330 = vset.pattern.permute.xlu2 %v386_v0  ;;  %329 = vset.pattern.permute.xlu1 %v386_v0  ;;  %v47_v3 = vld [vmem:[%s517_s1] sm:$0xff]  ;;  %v60_v4 = vld [vmem:[%s517_s1 + $0x68] sm:$0xff]  ;;  %v174_v7 = vld [vmem:[#allocation2 + $0x78] sm:$0xff] }
   0x8   :  { %328 = vset.pattern.permute.xlu0 %v386_v0  ;;  %110 = vperm.xlu2 %330, %v56_v1   ;;  %v59_v5 = vld [vmem:[%s517_s1 + $0x60] sm:$0xff]  ;;  %v173_v8 = vld [vmem:[#allocation2 + $0x70] sm:$0xff]  ;;  %v172_v9 = vld [vmem:[#allocation2 + $0x68] sm:$0xff] }
   0x9   :  { %105 = vperm.xlu0 %328, %v55_v2   ;;  %65 = vperm.xlu1 %329, %v47_v3   ;;  %v51_v6 = vld [vmem:[%s517_s1 + $0x20] sm:$0xff]  ;;  %v57_v10 = vld [vmem:[%s517_s1 + $0x50] sm:$0xff]  ;;  %v48_v11 = vld [vmem:[%s517_s1 + $0x8] sm:$0xff] }
   0xa   :  { %276 = vmatpush.msra.mxu2 %v174_v7  ;;  %175 = vmatpush.msra.mxu0 %v174_v7  ;;  %v52_v12 = vld [vmem:[%s517_s1 + $0x28] sm:$0xff]  ;;  %v53_v13 = vld [vmem:[%s517_s1 + $0x30] sm:$0xff]  ;;  %v50_v16 = vld [vmem:[%s517_s1 + $0x18] sm:$0xff] }
   0xb   :  { %275 = vmatpush.msra.mxu1 %v174_v7  ;;  %277 = vmatpush.msra.mxu3 %v174_v7  ;;  %v61_v14 = vld [vmem:[%s517_s1 + $0x70] sm:$0xff]  ;;  %v58_v17 = vld [vmem:[%s517_s1 + $0x58] sm:$0xff]  ;;  %v171_v20 = vld [vmem:[#allocation2 + $0x60] sm:$0xff] }
   0xc   :  { %279 = vmatpush.msra.mxu2 %v173_v8  ;;  %176 = vmatpush.msra.mxu0 %v173_v8  ;;  %v49_v15 = vld [vmem:[%s517_s1 + $0x10] sm:$0xff]  ;;  %v62_v18 = vld [vmem:[%s517_s1 + $0x78] sm:$0xff]  ;;  %v168_v23 = vld [vmem:[#allocation2 + $0x48] sm:$0xff] }
   0xd   :  { %278 = vmatpush.msra.mxu1 %v173_v8  ;;  %280 = vmatpush.msra.mxu3 %v173_v8  ;;  %v54_v19 = vld [vmem:[%s517_s1 + $0x38] sm:$0xff]  ;;  %v169_v22 = vld [vmem:[#allocation2 + $0x50] sm:$0xff]  ;;  %v167_v24 = vld [vmem:[#allocation2 + $0x40] sm:$0xff] }
   0xe   :  { %282 = vmatpush.msra.mxu2 %v172_v9  ;;  %177 = vmatpush.msra.mxu0 %v172_v9  ;;  %v170_v21 = vld [vmem:[#allocation2 + $0x58] sm:$0xff]  ;;  %v165_v26 = vld [vmem:[#allocation2 + $0x30] sm:$0xff]  ;;  %v164_v27 = vld [vmem:[#allocation2 + $0x28] sm:$0xff] }
   0xf   :  { %281 = vmatpush.msra.mxu1 %v172_v9  ;;  %283 = vmatpush.msra.mxu3 %v172_v9  ;;  %v166_v25 = vld [vmem:[#allocation2 + $0x38] sm:$0xff]  ;;  %v163_v28 = vld [vmem:[#allocation2 + $0x20] sm:$0xff]  ;;  %v161_v30 = vld [vmem:[#allocation2 + $0x10] sm:$0xff] }
  0x10   :  { %130 = vperm.xlu2 %330, %v60_v4   ;;  %285 = vmatpush.msra.mxu2 %v171_v20  ;;  %v162_v29 = vld [vmem:[#allocation2 + $0x18] sm:$0xff]  ;;  %v160_v31 = vld [vmem:[#allocation2 + $0x8] sm:$0xff]  ;;  %v159_v32 = vld [vmem:[#allocation2] sm:$0xff] }
  0x11   :  { %125 = vperm.xlu0 %328, %v59_v5   ;;  %85 = vperm.xlu1 %329, %v51_v6   ;;  %v39_v34 = vld [vmem:[%s516_s0 + $0x40] sm:$0xff]  ;;  %v40_v41 = vld [vmem:[%s516_s0 + $0x48] sm:$0xff]  ;;  %v41_v50 = vld [vmem:[%s516_s0 + $0x50] sm:$0xff] }
  0x12   :  { %178 = vmatpush.msra.mxu0 %v171_v20  ;;  %284 = vmatpush.msra.mxu1 %v171_v20  ;;  %v31_v35 = vld [vmem:[%s516_s0] sm:$0xff]  ;;  %v32_v51 = vld [vmem:[%s516_s0 + $0x8] sm:$0xff]  ;;  %v45_v61 = vld [vmem:[%s516_s0 + $0x70] sm:$0xff] }
  0x13   :  { %286 = vmatpush.msra.mxu3 %v171_v20  ;;  %288 = vmatpush.msra.mxu2 %v170_v21  ;;  %v43_v42 = vld [vmem:[%s516_s0 + $0x60] sm:$0xff]  ;;  %v44_v52 = vld [vmem:[%s516_s0 + $0x68] sm:$0xff]  ;;  %v37_v62 = vld [vmem:[%s516_s0 + $0x30] sm:$0xff] }
  0x14   :  { %179 = vmatpush.msra.mxu0 %v170_v21  ;;  %287 = vmatpush.msra.mxu1 %v170_v21  ;;  %v35_v44 = vld [vmem:[%s516_s0 + $0x20] sm:$0xff]  ;;  %v36_v53 = vld [vmem:[%s516_s0 + $0x28] sm:$0xff]  ;;  %v33_v63 = vld [vmem:[%s516_s0 + $0x10] sm:$0xff] }
  0x15   :  { %289 = vmatpush.msra.mxu3 %v170_v21  ;;  %291 = vmatpush.msra.mxu2 %v169_v22  ;;  %v42_v5 = vld [vmem:[%s516_s0 + $0x58] sm:$0xff] }
  0x16   :  { %180 = vmatpush.msra.mxu0 %v169_v22  ;;  %290 = vmatpush.msra.mxu1 %v169_v22  ;;  %v34_v7 = vld [vmem:[%s516_s0 + $0x18] sm:$0xff] }
  0x17   :  { %292 = vmatpush.msra.mxu3 %v169_v22  ;;  %294 = vmatpush.msra.mxu2 %v168_v23  ;;  %v46_v8 = vld [vmem:[%s516_s0 + $0x78] sm:$0xff] }
  0x18   :  { %115 = vperm.xlu2 %330, %v57_v10   ;;  %181 = vmatpush.msra.mxu0 %v168_v23 }
  0x19   :  { %70 = vperm.xlu0 %328, %v48_v11   ;;  %90 = vperm.xlu1 %329, %v52_v12  }
  0x1a   :  { %293 = vmatpush.msra.mxu1 %v168_v23  ;;  %295 = vmatpush.msra.mxu3 %v168_v23 }
  0x1b   :  { %297 = vmatpush.msra.mxu2 %v167_v24  ;;  %182 = vmatpush.msra.mxu0 %v167_v24 }
  0x1c   :  { %296 = vmatpush.msra.mxu1 %v167_v24  ;;  %298 = vmatpush.msra.mxu3 %v167_v24 }
  0x1d   :  { %300 = vmatpush.msra.mxu2 %v166_v25  ;;  %183 = vmatpush.msra.mxu0 %v166_v25 }
  0x1e   :  { %299 = vmatpush.msra.mxu1 %v166_v25  ;;  %301 = vmatpush.msra.mxu3 %v166_v25 }
  0x1f   :  { %303 = vmatpush.msra.mxu2 %v165_v26  ;;  %184 = vmatpush.msra.mxu0 %v165_v26 }
  0x20   :  { %95 = vperm.xlu2 %330, %v53_v13   ;;  %302 = vmatpush.msra.mxu1 %v165_v26 }
  0x21   :  { %135 = vperm.xlu0 %328, %v61_v14   ;;  %75 = vperm.xlu1 %329, %v49_v15   ;;  %v38_v14 = vld [vmem:[%s516_s0 + $0x38] sm:$0xff]  ;;  %s387_s0 = smov [#allocation5]  }
  0x22   :  { %304 = vmatpush.msra.mxu3 %v165_v26  ;;  %306 = vmatpush.msra.mxu2 %v164_v27  ;;  %s260_s28 = sshll.u32 %s387_s0, 4  ;;  %s261_s28 = int_to_ptr.vmem [resolvable:$true] %s260_s28 }
  0x23   :  { %185 = vmatpush.msra.mxu0 %v164_v27  ;;  %305 = vmatpush.msra.mxu1 %v164_v27 }
  0x24   :  { %307 = vmatpush.msra.mxu3 %v164_v27  ;;  %309 = vmatpush.msra.mxu2 %v163_v28 }
  0x25   :  { %186 = vmatpush.msra.mxu0 %v163_v28  ;;  %308 = vmatpush.msra.mxu1 %v163_v28 }
  0x26   :  { %310 = vmatpush.msra.mxu3 %v163_v28  ;;  %312 = vmatpush.msra.mxu2 %v162_v29 }
  0x27   :  { %187 = vmatpush.msra.mxu0 %v162_v29  ;;  %311 = vmatpush.msra.mxu1 %v162_v29 }
  0x28   :  { %80 = vperm.xlu2 %330, %v50_v16   ;;  %313 = vmatpush.msra.mxu3 %v162_v29 }
  0x29   :  { %120 = vperm.xlu0 %328, %v58_v17   ;;  %140 = vperm.xlu1 %329, %v62_v18  }
  0x2a   :  { %315 = vmatpush.msra.mxu2 %v161_v30  ;;  %188 = vmatpush.msra.mxu0 %v161_v30 }
  0x2b   :  { %314 = vmatpush.msra.mxu1 %v161_v30  ;;  %316 = vmatpush.msra.mxu3 %v161_v30 }
  0x2c   :  { %318 = vmatpush.msra.mxu2 %v160_v31  ;;  %189 = vmatpush.msra.mxu0 %v160_v31 }
  0x2d   :  { %317 = vmatpush.msra.mxu1 %v160_v31  ;;  %319 = vmatpush.msra.mxu3 %v160_v31 }
  0x2e   :  { %321 = vmatpush.msra.mxu2 %v159_v32  ;;  %190 = vmatpush.msra.mxu0 %v159_v32 }
  0x2f   :  { %320 = vmatpush.msra.mxu1 %v159_v32  ;;  %322 = vmatpush.msra.mxu3 %v159_v32 }
  0x31   :  { %100 = vperm.xlu0 %328, %v54_v19  }
  0x62   :  { %v111_v33 = vpop.permute.xlu2 %110 }
  0x63   :  { %v152_v43 = vmul.f32 %v111_v33, %v40_v41 }
  0x6a   :  { %v131_v37 = vpop.permute.xlu2 %130 }
  0x6b   :  { %v156_v58 = vmul.f32 %v131_v37, %v44_v52 }
  0x72   :  { %v116_v49 = vpop.permute.xlu2 %115 }
  0x73   :  { %v153_v55 = vmul.f32 %v116_v49, %v41_v50 }
  0x7a   :  { %v96_v60 = vpop.permute.xlu2 %95 }
  0x7b   :  { %v106_v36 = vpop.permute.xlu0 %105  ;;  %v66_v39 = vpop.permute.xlu1 %65  ;;  %v149_v3 = vmul.f32 %v96_v60, %v37_v62 }
  0x7c   :  { %v151_v38 = vmul.f32 %v106_v36, %v39_v34  ;;  %v143_v40 = vmul.f32 %v66_v39, %v31_v35 }
  0x7e   :  { %215 = vmatmul.f32.vlgmr.msra.gmra.mxu2 %v151_v38  ;;  %191 = vmatmul.f32.vlgmr.msra.gmra.mxu0 %v143_v40 }
  0x82   :  { %v81_v6 = vpop.permute.xlu2 %80 }
  0x83   :  { %v126_v45 = vpop.permute.xlu0 %125  ;;  %v86_v47 = vpop.permute.xlu1 %85  ;;  %v146_v12 = vmul.f32 %v81_v6, %v34_v7 }
  0x84   :  { %v155_v46 = vmul.f32 %v126_v45, %v43_v42  ;;  %v147_v48 = vmul.f32 %v86_v47, %v35_v44 }
  0x86   :  { %218 = vmatmul.f32.gmra.mxu2 %v152_v43  ;;  %227 = vmatmul.f32.vlgmr.msra.gmra.mxu3 %v155_v46 }
  0x87   :  { %203 = vmatmul.f32.vlgmr.msra.gmra.mxu1 %v147_v48 }
  0x8b   :  { %v71_v54 = vpop.permute.xlu0 %70  ;;  %v91_v57 = vpop.permute.xlu1 %90 }
  0x8c   :  { %v144_v56 = vmul.f32 %v71_v54, %v32_v51  ;;  %v148_v59 = vmul.f32 %v91_v57, %v36_v53 }
  0x8e   :  { %194 = vmatmul.f32.gmra.mxu0 %v144_v56  ;;  %221 = vmatmul.f32.gmra.mxu2 %v153_v55 }
  0x8f   :  { %206 = vmatmul.f32.gmra.mxu1 %v148_v59  ;;  %230 = vmatmul.f32.gmra.mxu3 %v156_v58 }
  0x93   :  { %v136_v0 = vpop.permute.xlu0 %135  ;;  %v76_v2 = vpop.permute.xlu1 %75 }
  0x94   :  { %v157_v1 = vmul.f32 %v136_v0, %v45_v61  ;;  %v145_v4 = vmul.f32 %v76_v2, %v33_v63 }
  0x96   :  { %197 = vmatmul.f32.gmra.mxu0 %v145_v4 }
  0x97   :  { %209 = vmatmul.f32.gmra.mxu1 %v149_v3  ;;  %233 = vmatmul.f32.gmra.mxu3 %v157_v1 }
  0x9b   :  { %v121_v9 = vpop.permute.xlu0 %120  ;;  %v141_v11 = vpop.permute.xlu1 %140 }
  0x9c   :  { %v154_v10 = vmul.f32 %v121_v9, %v42_v5  ;;  %v158_v13 = vmul.f32 %v141_v11, %v46_v8 }
  0x9e   :  { %224 = vmatmul.f32.gmra.mxu2 %v154_v10  ;;  %200 = vmatmul.f32.gmra.mxu0 %v146_v12 }
  0x9f   :  { %236 = vmatmul.f32.gmra.mxu3 %v158_v13 }
  0xa3   :  { %v101_v15 = vpop.permute.xlu0 %100 }
  0xa4   :  { %v150_v16 = vmul.f32 %v101_v15, %v38_v14 }
  0xa6   :  { %212 = vmatmul.f32.gmra.mxu1 %v150_v16 }
  0xfb   :  { %v192_v17 = vpop.f32.mrf.mxu0 }
  0xfc   :  { %240 = vst [vmem:[#allocation5] sm:$0xff] %v192_v17 }
 0x101   :  { %v216_v18 = vpop.f32.mrf.mxu2 }
 0x102   :  { %248 = vst [vmem:[#allocation5 + $0x40] sm:$0xff] %v216_v18 }
 0x104   :  { %v204_v19 = vpop.f32.mrf.mxu1 }
 0x105   :  { %244 = vst [vmem:[#allocation5 + $0x20] sm:$0xff] %v204_v19 }
 0x109   :  { %v219_v20 = vpop.f32.mrf.mxu2  ;;  %v228_v21 = vpop.f32.mrf.mxu3 }
 0x10a   :  { %249 = vst [vmem:[#allocation5 + $0x48] sm:$0xff] %v219_v20 }
 0x10b   :  { %252 = vst [vmem:[#allocation5 + $0x60] sm:$0xff] %v228_v21  ;;  %v195_v22 = vpop.f32.mrf.mxu0 }
 0x10c   :  { %241 = vst [vmem:[#allocation5 + $0x8] sm:$0xff] %v195_v22  ;;  %v207_v23 = vpop.f32.mrf.mxu1 }
 0x10d   :  { %245 = vst [vmem:[#allocation5 + $0x28] sm:$0xff] %v207_v23 }
 0x111   :  { %v222_v24 = vpop.f32.mrf.mxu2 }
 0x112   :  { %250 = vst [vmem:[#allocation5 + $0x50] sm:$0xff] %v222_v24  ;;  %v231_v25 = vpop.f32.mrf.mxu3 }
 0x113   :  { %253 = vst [vmem:[#allocation5 + $0x68] sm:$0xff] %v231_v25  ;;  %v198_v26 = vpop.f32.mrf.mxu0 }
 0x114   :  { %v210_v27 = vpop.f32.mrf.mxu1  ;;  %242 = vst [vmem:[#allocation5 + $0x10] sm:$0xff] %v198_v26 }
 0x115   :  { %246 = vst [vmem:[#allocation5 + $0x30] sm:$0xff] %v210_v27 }
 0x11a   :  { %v234_v28 = vpop.f32.mrf.mxu3 }
 0x11b   :  { %254 = vst [vmem:[#allocation5 + $0x70] sm:$0xff] %v234_v28  ;;  %v201_v29 = vpop.f32.mrf.mxu0 }
 0x11c   :  { %243 = vst [vmem:[#allocation5 + $0x18] sm:$0xff] %v201_v29 }
 0x121   :  { %v225_v30 = vpop.f32.mrf.mxu2 }
 0x122   :  { %251 = vst [vmem:[#allocation5 + $0x58] sm:$0xff] %v225_v30  ;;  %v237_v31 = vpop.f32.mrf.mxu3 }
 0x123   :  { %v213_v32 = vpop.f32.mrf.mxu1  ;;  %255 = vst [vmem:[#allocation5 + $0x78] sm:$0xff] %v237_v31 }
 0x124   :  { %247 = vst [vmem:[#allocation5 + $0x38] sm:$0xff] %v213_v32 }
 0x125   :  { %268 = dma.vmem_to_hbm [thread:$0]  %s261_s28, 2048, %s263_s4, [#allocation4], %s384_s17, %s384_s17, %s385_s18  }
 0x126   :  { %381 = dma.done.wait [#allocation4], 2048  }
 0x127   :  { %382 = vsyncadd [#allocation4], 4294965248 }
 0x128   :  { %273 = vsyncpa [#allocation3], 1 }
 0x129   :  { %274 = vsyncpa [#allocation4], 1 }

</bundles_post_ra>
